<compile_context>
chip_gen: v6e
topology: v6e:2x2x1
jax: 0.10.0
libtpu: 0.0.40
codegen_flags: <defaults>
</compile_context>

<pallas_src>
import jax
import jax.numpy as jnp
from jax.experimental import pallas as pl
from jax.experimental.pallas import tpu as pltpu

CP = 128          # lane-dense padded width for Cmid / num_classes
BT_MAX = 32       # batch block per grid step (multiple of 8; VMEM-safe on v7x)


def planet_wrapper_kernel(p_ref, wconv_ref, bconv_ref, wfc_ref, bfc_ref, out_ref):
    """Fused classifier + sigmoid for a block of Bt images.

    p_ref    : (Bt, H*W, KH*KW*Cin)  im2col patch block (bf16, VMEM)
    wconv_ref: (KH*KW*Cin, CP)       conv weights, Cmid zero-padded to CP lanes (bf16)
    bconv_ref: (1, CP)               conv bias (f32, padded)
    wfc_ref  : (CP, CP)              FC weights (Cmid x NC zero-padded, bf16)
    bfc_ref  : (1, CP)               FC bias (f32, padded)
    out_ref  : (Bt, CP)              sigmoid probabilities (lane-dense, sliced by wrapper)
    """
    bt, hw, kk = p_ref.shape

    # (Bt, HW, KK) -> (Bt*HW, KK) is a no-op leading-dim merge (HW = 256, multiple of 8).
    patches = p_ref[...].reshape(bt * hw, kk)                      # bf16

    # conv-as-one-matmul on the MXU (bf16 in, f32 accumulate), bias + ReLU on the VPU.
    conv = jnp.dot(patches, wconv_ref[...], preferred_element_type=jnp.float32)
    conv = jnp.maximum(conv + bconv_ref[...], 0.0)                 # (Bt*HW, CP) f32

    # Global average pool: per-image sublane reduction -> (Bt, CP).
    pooled = jnp.sum(conv.reshape(bt, hw, CP), axis=1) * (1.0 / hw)

    # Fully-connected head (MXU, bf16 x bf16 -> f32) + sigmoid.
    logits = jnp.dot(pooled.astype(wfc_ref.dtype), wfc_ref[...],
                     preferred_element_type=jnp.float32) + bfc_ref[...]
    out_ref[...] = jax.nn.sigmoid(logits)                          # torch.sigmoid(model(x))


def convert_torch_conv_weight(w_oihw):
    """PyTorch Conv2d weights are OIHW; this kernel expects HWIO."""
    return jnp.transpose(w_oihw, (2, 3, 1, 0))


def model_wrapper_forward(x_nchw, wconv, bconv, wfc, bfc):
    """Equivalent of ModelWrapper.forward: per-class probabilities, shape (B, NC).

    wconv is HWIO (use convert_torch_conv_weight for real PyTorch OIHW weights).
    """
    B, Cin, H, W = x_nchw.shape
    KH, KW, _, Cmid = wconv.shape
    NC = wfc.shape[1]
    KK = KH * KW * Cin
    HW = H * W

    # NCHW -> NHWC, "same" zero-pad, im2col; slab cast to bf16 (f32 accumulation in-kernel).
    # TODO(synk): for large H*W / B, move im2col into the kernel (DMA the padded image and
    # build taps with static slices) to cut HBM input bytes ~9x; and/or store the slab as
    # (B, KK, HW) so the 256-wide HW axis is the lane dim (no 36->128 lane pad in HBM/VMEM).
    x = jnp.transpose(x_nchw, (0, 2, 3, 1)).astype(jnp.float32)
    ph, pw = KH // 2, KW // 2
    xp = jnp.pad(x, ((0, 0), (ph, ph), (pw, pw), (0, 0)))
    taps = [xp[:, kh:kh + H, kw:kw + W, :] for kh in range(KH) for kw in range(KW)]
    patches = jnp.concatenate(taps, axis=-1).reshape(B, HW, KK).astype(jnp.bfloat16)

    # Batch blocking: Bt images per grid step (amortizes per-step overhead Bt-fold).
    Bt = B if B <= BT_MAX else BT_MAX                 # Bt==B (grid 1) or a multiple of 8
    B_pad = -(-B // Bt) * Bt
    if B_pad != B:
        patches = jnp.pad(patches, ((0, B_pad - B), (0, 0), (0, 0)))

    # Lane-dense (zero-padded to 128) weights -> full-width vregs + unmasked output stores.
    wconv_mat = jnp.zeros((KK, CP), jnp.bfloat16).at[:, :Cmid].set(
        wconv.reshape(KK, Cmid).astype(jnp.bfloat16))
    bconv_p = jnp.zeros((1, CP), jnp.float32).at[:, :Cmid].set(bconv.astype(jnp.float32))
    wfc_p = jnp.zeros((CP, CP), jnp.bfloat16).at[:Cmid, :NC].set(wfc.astype(jnp.bfloat16))
    bfc_p = jnp.zeros((1, CP), jnp.float32).at[:, :NC].set(bfc.astype(jnp.float32))

    itemsize = patches.dtype.itemsize
    cost = pl.CostEstimate(
        flops=2 * B_pad * HW * KK * CP + 2 * B_pad * CP * CP,
        transcendentals=B_pad * CP,
        bytes_accessed=(patches.size * itemsize
                        + wconv_mat.size * 2 + wfc_p.size * 2
                        + bconv_p.size * 4 + bfc_p.size * 4
                        + B_pad * CP * 4),
    )

    out = pl.pallas_call(
        planet_wrapper_kernel,
        out_shape=jax.ShapeDtypeStruct((B_pad, CP), jnp.float32),
        grid_spec=pl.GridSpec(
            grid=(B_pad // Bt,),
            in_specs=[
                pl.BlockSpec((Bt, HW, KK), lambda b: (b, 0, 0)),   # per-step patch block
                pl.BlockSpec((KK, CP), lambda b: (0, 0)),
                pl.BlockSpec((1, CP), lambda b: (0, 0)),
                pl.BlockSpec((CP, CP), lambda b: (0, 0)),
                pl.BlockSpec((1, CP), lambda b: (0, 0)),
            ],
            out_specs=pl.BlockSpec((Bt, CP), lambda b: (b, 0)),
        ),
        compiler_params=pltpu.CompilerParams(
            dimension_semantics=("parallel",),        # batch grid sharded across v7x's 2 TCs
            vmem_limit_bytes=32 * 1024 * 1024,        # explicit; safe on v7x's 64 MiB VMEM
        ),
        cost_estimate=cost,
    )(patches, wconv_mat, bconv_p, wfc_p, bfc_p)

    return out[:B, :NC]


def _reference_forward(x_nchw, wconv, bconv, wfc, bfc):
    """Pure-JAX reference (mirrors the PyTorch semantics) for validation."""
    x = jnp.transpose(x_nchw, (0, 2, 3, 1)).astype(jnp.float32)
    y = jax.lax.conv_general_dilated(
        x, wconv, window_strides=(1, 1), padding="SAME",
        dimension_numbers=("NHWC", "HWIO", "NHWC"))
    y = jnp.maximum(y + bconv[None, None, None, :], 0.0)
    pooled = jnp.mean(y, axis=(1, 2))
    logits = pooled @ wfc + bfc[None, :]
    return jax.nn.sigmoid(logits)


if __name__ == "__main__":
    # Small shapes: batch=2, channels=4, spatial=16x16, hidden conv channels=8, 6 classes.
    B, Cin, H, W = 2, 4, 16, 16
    Cmid, NC = 8, 6

    classes = tuple(f"class_{i}" for i in range(NC))       # mirrors ModelWrapper.classes
    size = (H, W)                                           # mirrors ModelWrapper.size
    thresholds = tuple(0.5 for _ in range(NC))              # mirrors ModelWrapper.thresholds
    # (classes/size/thresholds are metadata only; forward() just returns sigmoid(model(x)))

    key = jax.random.PRNGKey(0)
    kx, kw1, kb1, kw2, kb2 = jax.random.split(key, 5)

    x = jax.random.normal(kx, (B, Cin, H, W), dtype=jnp.float32)                # NCHW input
    wconv = 0.1 * jax.random.normal(kw1, (3, 3, Cin, Cmid), dtype=jnp.float32)  # HWIO
    bconv = 0.1 * jax.random.normal(kb1, (Cmid,), dtype=jnp.float32)
    wfc = 0.1 * jax.random.normal(kw2, (Cmid, NC), dtype=jnp.float32)
    bfc = 0.1 * jax.random.normal(kb2, (NC,), dtype=jnp.float32)

    probs = model_wrapper_forward(x, wconv, bconv, wfc, bfc)
    probs = jax.block_until_ready(probs)

    ref = _reference_forward(x, wconv, bconv, wfc, bfc)
    assert probs.shape == (B, NC)
    assert jnp.all((probs >= 0.0) & (probs <= 1.0))
    # bf16 inputs / f32 accumulation -> tolerance loosened vs the all-f32 version.
    assert jnp.allclose(probs, ref, atol=2e-2, rtol=2e-2), (probs, ref)

    print("KERNEL_OK")
</pallas_src>

<mosaic_0001>
module attributes {stable_mosaic.version = 11 : i64} {
  func.func @planet_wrapper_kernel(%arg0: i32, %arg1: memref<2x256x36xbf16, #tpu.memory_space<vmem>>, %arg2: memref<36x128xbf16, #tpu.memory_space<vmem>>, %arg3: memref<1x128xf32, #tpu.memory_space<vmem>>, %arg4: memref<128x128xbf16, #tpu.memory_space<vmem>>, %arg5: memref<1x128xf32, #tpu.memory_space<vmem>>, %arg6: memref<2x128xf32, #tpu.memory_space<vmem>>) attributes {dimension_semantics = [#tpu.dimension_semantics<parallel>], iteration_bounds = array<i64: 1>, scalar_prefetch = 0 : i64, scratch_operands = 0 : i64, tpu.core_type = #tpu.core_type<tc>, window_params = [{transform_indices = @transform_0, window_bounds = array<i64: 2, 256, 36>}, {pipeline_mode = #tpu.pipeline_mode<synchronous>, transform_indices = @transform_1, window_bounds = array<i64: 36, 128>}, {pipeline_mode = #tpu.pipeline_mode<synchronous>, transform_indices = @transform_2, window_bounds = array<i64: 1, 128>}, {pipeline_mode = #tpu.pipeline_mode<synchronous>, transform_indices = @transform_3, window_bounds = array<i64: 128, 128>}, {pipeline_mode = #tpu.pipeline_mode<synchronous>, transform_indices = @transform_4, window_bounds = array<i64: 1, 128>}, {transform_indices = @transform_5, window_bounds = array<i64: 2, 128>}]} {
    %c0 = arith.constant 0 : index
    %c0_0 = arith.constant 0 : index
    %c0_1 = arith.constant 0 : index
    %0 = vector.load %arg1[%c0, %c0_0, %c0_1] : memref<2x256x36xbf16, #tpu.memory_space<vmem>>, vector<2x256x36xbf16>
    %1 = vector.shape_cast %0 : vector<2x256x36xbf16> to vector<512x36xbf16>
    %c0_2 = arith.constant 0 : index
    %c0_3 = arith.constant 0 : index
    %2 = vector.load %arg2[%c0_2, %c0_3] : memref<36x128xbf16, #tpu.memory_space<vmem>>, vector<36x128xbf16>
    %cst = arith.constant dense<0.000000e+00> : vector<512x128xf32>
    %3 = tpu.matmul %1, %2, %cst {dimension_numbers = #tpu.dot_dimension_numbers<[1], [0], [0], [1], [0, 0, 1, 1], [], []>} : vector<512x36xbf16>, vector<36x128xbf16>, vector<512x128xf32> -> vector<512x128xf32>
    %c0_4 = arith.constant 0 : index
    %c0_5 = arith.constant 0 : index
    %4 = vector.load %arg3[%c0_4, %c0_5] : memref<1x128xf32, #tpu.memory_space<vmem>>, vector<1x128xf32>
    %5 = vector.broadcast %4 : vector<1x128xf32> to vector<512x128xf32>
    %6 = arith.addf %3, %5 : vector<512x128xf32>
    %cst_6 = arith.constant 0.000000e+00 : f32
    %7 = vector.broadcast %cst_6 : f32 to vector<512x128xf32>
    %8 = arith.maximumf %6, %7 : vector<512x128xf32>
    %9 = vector.shape_cast %8 : vector<512x128xf32> to vector<2x256x128xf32>
    %cst_7 = arith.constant dense<0.000000e+00> : vector<2x128xf32>
    %10 = vector.multi_reduction <add>, %9, %cst_7 [1] : vector<2x256x128xf32> to vector<2x128xf32>
    %cst_8 = arith.constant 3.906250e-03 : f32
    %11 = vector.broadcast %cst_8 : f32 to vector<2x128xf32>
    %12 = arith.mulf %10, %11 : vector<2x128xf32>
    %13 = arith.truncf %12 : vector<2x128xf32> to vector<2x128xbf16>
    %c0_9 = arith.constant 0 : index
    %c0_10 = arith.constant 0 : index
    %14 = vector.load %arg4[%c0_9, %c0_10] : memref<128x128xbf16, #tpu.memory_space<vmem>>, vector<128x128xbf16>
    %cst_11 = arith.constant dense<0.000000e+00> : vector<2x128xf32>
    %15 = tpu.matmul %13, %14, %cst_11 {dimension_numbers = #tpu.dot_dimension_numbers<[1], [0], [0], [1], [0, 0, 1, 1], [], []>} : vector<2x128xbf16>, vector<128x128xbf16>, vector<2x128xf32> -> vector<2x128xf32>
    %c0_12 = arith.constant 0 : index
    %c0_13 = arith.constant 0 : index
    %16 = vector.load %arg5[%c0_12, %c0_13] : memref<1x128xf32, #tpu.memory_space<vmem>>, vector<1x128xf32>
    %17 = vector.broadcast %16 : vector<1x128xf32> to vector<2x128xf32>
    %18 = arith.addf %15, %17 : vector<2x128xf32>
    %19 = arith.negf %18 : vector<2x128xf32>
    %20 = math.exp %19 : vector<2x128xf32>
    %cst_14 = arith.constant 1.000000e+00 : f32
    %21 = vector.broadcast %cst_14 : f32 to vector<2x128xf32>
    %22 = arith.addf %21, %20 : vector<2x128xf32>
    %23 = arith.divf %21, %22 : vector<2x128xf32>
    %c0_15 = arith.constant 0 : index
    %c0_16 = arith.constant 0 : index
    %24 = vector.load %arg6[%c0_15, %c0_16] : memref<2x128xf32, #tpu.memory_space<vmem>>, vector<2x128xf32>
    tpu.vector_store %arg6[%c0_15, %c0_16], %23 {strides = array<i32>} : memref<2x128xf32, #tpu.memory_space<vmem>>, vector<2x128xf32>,
    return
  }
  func.func @transform_0(%arg0: i32) -> (i32, i32, i32) {
    %c0_i32 = arith.constant 0 : i32
    %c0_i32_0 = arith.constant 0 : i32
    %c0_i32_1 = arith.constant 0 : i32
    return %arg0, %c0_i32, %c0_i32_0 : i32, i32, i32
  }
  func.func @transform_1(%arg0: i32) -> (i32, i32) {
    %c0_i32 = arith.constant 0 : i32
    %c0_i32_0 = arith.constant 0 : i32
    %c0_i32_1 = arith.constant 0 : i32
    return %c0_i32, %c0_i32_0 : i32, i32
  }
  func.func @transform_2(%arg0: i32) -> (i32, i32) {
    %c0_i32 = arith.constant 0 : i32
    %c0_i32_0 = arith.constant 0 : i32
    %c0_i32_1 = arith.constant 0 : i32
    return %c0_i32, %c0_i32_0 : i32, i32
  }
  func.func @transform_3(%arg0: i32) -> (i32, i32) {
    %c0_i32 = arith.constant 0 : i32
    %c0_i32_0 = arith.constant 0 : i32
    %c0_i32_1 = arith.constant 0 : i32
    return %c0_i32, %c0_i32_0 : i32, i32
  }
  func.func @transform_4(%arg0: i32) -> (i32, i32) {
    %c0_i32 = arith.constant 0 : i32
    %c0_i32_0 = arith.constant 0 : i32
    %c0_i32_1 = arith.constant 0 : i32
    return %c0_i32, %c0_i32_0 : i32, i32
  }
  func.func @transform_5(%arg0: i32) -> (i32, i32) {
    %c0_i32 = arith.constant 0 : i32
    %c0_i32_0 = arith.constant 0 : i32
    return %arg0, %c0_i32 : i32, i32
  }
}

</mosaic_0001>

<bundles_post_ra>
// kernel: tpu_custom_call.1
= control target key start
LH: loop header
LB: loop body
LE: loop exit
PB: predicated region body
PF: predicated region fallthrough
CT: control target
= control target key end

     0   :  { %vm370_vm0 = vcmask 1041408   ;;  %vm273_vm1 = vcmask 293888   ;;  %s1558_s0 = inlined_call_operand.vmem [shape: bf16[2,256,36], index: 0, kind: input, shape index: {}]   ;;  %s1559_s1 = inlined_call_operand.vmem [shape: bf16[36,128], index: 1, kind: input, shape index: {}]   ;;  %s1560_s2 = inlined_call_operand.vmem [shape: f32[1,128], index: 2, kind: input, shape index: {}]   ;;  %s1561_s3 = inlined_call_operand.vmem [shape: bf16[128,128], index: 3, kind: input, shape index: {}]   ;;  %s1562_s4 = inlined_call_operand.vmem [shape: f32[1,128], index: 4, kind: input, shape index: {}]   ;;  %s1563_s5 = inlined_call_operand.hbm [shape: f32[2,128], index: 5, kind: output, shape index: {}]  }
   0x1   :  { %v1168_v0 = vld [vmem:[%s1559_s1 + $0x10] ss:$0 sps:$4 sm:$0x33]   ;;  %v1169_v1 = vld [vmem:[%s1559_s1 + $0x8] sm:$0xff]   ;;  %v1171_v3 = vld [vmem:[%s1558_s0] sm:$0xff]  }
   0x2   :  { %1163 = vmatprep.subr.msk.bf16.mxu0 %vm370_vm0, %v1168_v0  ;;  %v372_v2 = vsel %vm370_vm0, %v1168_v0, 0  ;;  %1164 = vmatprep.subr.msk.bf16.mxu1 %vm370_vm0, %v1168_v0  ;;  %v1170_v4 = vld [vmem:[%s1559_s1] sm:$0xff]   ;;  %v1172_v5 = vld [vmem:[%s1558_s0 + $0x8] sm:$0xff]   ;;  %v1173_v6 = vld [vmem:[%s1558_s0 + $0x10] sm:$0xff]  }
   0x3   :  { %1068 = vmatpush3.bf16.msra.mxu0 %v372_v2  ;;  %1160 = vmatpush3.bf16.msra.mxu1 %v372_v2  ;;  %v1174_v7 = vld [vmem:[%s1558_s0 + $0x18] sm:$0xff]   ;;  %v1175_v8 = vld [vmem:[%s1558_s0 + $0x20] sm:$0xff]   ;;  %v1189_v9 = vld [vmem:[%s1558_s0 + $0x90] sm:$0xff]  }
   0x4   :  { %1069 = vmatprep.subr.bf16.mxu0 %v1169_v1  ;;  %1158 = vmatprep.subr.bf16.mxu1 %v1169_v1  ;;  %v1190_v10 = vld [vmem:[%s1558_s0 + $0x98] sm:$0xff]   ;;  %v1191_v11 = vld [vmem:[%s1558_s0 + $0xa0] sm:$0xff]   ;;  %v1176_v12 = vld [vmem:[%s1558_s0 + $0x28] sm:$0xff]  }
   0x5   :  { %1073 = vmatprep.mubr.msk.bf16.mxu0 %vm273_vm1, %v1171_v3  ;;  %1109 = vmatprep.mubr.msk.bf16.mxu1 %vm273_vm1, %v1189_v9  ;;  %v1177_v13 = vld [vmem:[%s1558_s0 + $0x30] sm:$0xff]   ;;  %v1192_v14 = vld [vmem:[%s1558_s0 + $0xa8] sm:$0xff]   ;;  %v1178_v16 = vld [vmem:[%s1558_s0 + $0x38] sm:$0xff]  }
   0x6   :  { %v1193_v15 = vld [vmem:[%s1558_s0 + $0xb0] sm:$0xff]   ;;  %v1179_v17 = vld [vmem:[%s1558_s0 + $0x40] sm:$0xff]   ;;  %v1194_v18 = vld [vmem:[%s1558_s0 + $0xb8] sm:$0xff]  }
   0x7   :  { %1070 = vmatpush3.bf16.msra.mxu0 %v1169_v1  ;;  %1161 = vmatpush3.bf16.msra.mxu1 %v1169_v1  ;;  %v1195_v19 = vld [vmem:[%s1558_s0 + $0xc0] sm:$0xff]  }
   0x8   :  { %1071 = vmatprep.subr.bf16.mxu0 %v1170_v4  ;;  %1159 = vmatprep.subr.bf16.mxu1 %v1170_v4 }
   0xb   :  { %1072 = vmatpush3.bf16.msra.mxu0 %v1170_v4  ;;  %1162 = vmatpush3.bf16.msra.mxu1 %v1170_v4 }
   0xe   :  { %1074 = vmatmul.mubr.msk.bf16.vlgmr.msra.gmra.mxu0 %vm273_vm1, %v1172_v5  ;;  %1110 = vmatmul.mubr.msk.bf16.vlgmr.msra.gmra.mxu1 %vm273_vm1, %v1190_v10 }
   0xf   :  { %1077 = vmatprep.mubr.msk.bf16.mxu0 %vm273_vm1, %v1173_v6  ;;  %1113 = vmatprep.mubr.msk.bf16.mxu1 %vm273_vm1, %v1191_v11 }
  0x16   :  { %1078 = vmatmul.mubr.msk.bf16.gmra.mxu0 %vm273_vm1, %v1174_v7  ;;  %1114 = vmatmul.mubr.msk.bf16.gmra.mxu1 %vm273_vm1, %v1192_v14 }
  0x17   :  { %1081 = vmatprep.mubr.msk.bf16.mxu0 %vm273_vm1, %v1175_v8  ;;  %1117 = vmatprep.mubr.msk.bf16.mxu1 %vm273_vm1, %v1193_v15 }
  0x1e   :  { %1082 = vmatmul.mubr.msk.bf16.gmra.mxu0 %vm273_vm1, %v1176_v12  ;;  %1118 = vmatmul.mubr.msk.bf16.gmra.mxu1 %vm273_vm1, %v1194_v18 }
  0x1f   :  { %1085 = vmatprep.mubr.msk.bf16.mxu0 %vm273_vm1, %v1177_v13 }
  0x26   :  { %1086 = vmatmul.mubr.msk.bf16.gmra.mxu0 %vm273_vm1, %v1178_v16 }
  0x27   :  { %1089 = vmatprep.mubr.msk.bf16.mxu0 %vm273_vm1, %v1179_v17 }
  0x28   :  { %10 = vsyncpa [#allocation3], 0  ;;  %1121 = vmatprep.mubr.msk.bf16.mxu1 %vm273_vm1, %v1195_v19  ;;  %v1180_v20 = vld [vmem:[%s1558_s0 + $0x48] sm:$0xff]   ;;  %v1181_v21 = vld [vmem:[%s1558_s0 + $0x50] sm:$0xff]   ;;  %v1237_v37 = vmov 0.0   ;;  %vm1238_vm2 = vmmov 0  }
  0x29   :  { %v1196_v22 = vld [vmem:[%s1558_s0 + $0xc8] sm:$0xff]   ;;  %v1197_v23 = vld [vmem:[%s1558_s0 + $0xd0] sm:$0xff]   ;;  %v1182_v24 = vld [vmem:[%s1558_s0 + $0x58] sm:$0xff]   ;;  %1137 = vmatprep.subr.bf16.mxu1 %v1237_v37  ;;  %vm832_vm3 = vcmask 1041409   ;;  %s1239_s27 = smov [#allocation2]  }
  0x2a   :  { %1122 = vmatmul.mubr.msk.bf16.gmra.mxu1 %vm273_vm1, %v1196_v22  ;;  %v1183_v25 = vld [vmem:[%s1558_s0 + $0x60] sm:$0xff]   ;;  %v1198_v26 = vld [vmem:[%s1558_s0 + $0xd8] sm:$0xff]   ;;  %v1184_v28 = vld [vmem:[%s1558_s0 + $0x68] sm:$0xff]   ;;  %s937_s28 = sshll.u32 %s1239_s27, 4  ;;  %s938_s28 = int_to_ptr.vmem [resolvable:$true] %s937_s28 }
  0x2b   :  { %1125 = vmatprep.mubr.msk.bf16.mxu1 %vm273_vm1, %v1197_v23  ;;  %v1199_v27 = vld [vmem:[%s1558_s0 + $0xe0] sm:$0xff]   ;;  %v1185_v29 = vld [vmem:[%s1558_s0 + $0x70] sm:$0xff]   ;;  %v1200_v30 = vld [vmem:[%s1558_s0 + $0xe8] sm:$0xff]   ;;  %s1215_s29 = scalar_lea.vmem %s938_s28, 32  ;;  %p1220_p1 = scmp.lt.s32.totalorder %s938_s28, %s938_s28 }
  0x2c   :  { %v1201_v31 = vld [vmem:[%s1558_s0 + $0xf0] sm:$0xff]   ;;  %v1186_v32 = vld [vmem:[%s1558_s0 + $0x78] sm:$0xff]   ;;  %v1187_v33 = vld [vmem:[%s1558_s0 + $0x80] sm:$0xff]   ;;  %p1216_p0 = scmp.ne.s32.totalorder %s938_s28, %s1215_s29  ;;  %p1221_p2 = scmp.lt.s32.totalorder %s1215_s29, %s1215_s29 }
  0x2d   :  { %v1202_v34 = vld [vmem:[%s1558_s0 + $0xf8] sm:$0xff]   ;;  %v1188_v35 = vld [vmem:[%s1558_s0 + $0x88] sm:$0xff]   ;;  %v1204_v38 = vld [vmem:[%s1561_s3 + $0x30] sm:$0xff]  }
  0x2e   :  { %1090 = vmatmul.mubr.msk.bf16.gmra.mxu0 %vm273_vm1, %v1180_v20  ;;  %v1203_v36 = vld [vmem:[%s1561_s3 + $0x38] sm:$0xff]   ;;  %v1205_v40 = vld [vmem:[%s1561_s3 + $0x28] sm:$0xff]   ;;  %v1422_v42 = vld [vmem:[%s1560_s2] ss:$0 sm:$0xff]  ;;  %p1222_p3 = por %p1221_p2, %p1220_p1 }
  0x2f   :  { %1093 = vmatprep.mubr.msk.bf16.mxu0 %vm273_vm1, %v1181_v21  ;;  %1138 = vmatpush3.bf16.msra.mxu1 %v1203_v36  ;;  %v1206_v52 = vld [vmem:[%s1561_s3 + $0x20] sm:$0xff]   ;;  %v1207_v60 = vld [vmem:[%s1561_s3 + $0x18] sm:$0xff]   ;;  %v1208_v7 = vld [vmem:[%s1561_s3 + $0x10] sm:$0xff]  }
  0x30   :  { %1139 = vmatprep.subr.bf16.mxu1 %v1237_v37  ;;  %v1209_v16 = vld [vmem:[%s1561_s3 + $0x8] sm:$0xff]   ;;  %p1223_p4 = pnand %p1222_p3, %p1216_p0 }
  0x32   :  { %1126 = vmatmul.mubr.msk.bf16.gmra.mxu1 %vm273_vm1, %v1198_v26 }
  0x33   :  { %1129 = vmatprep.mubr.msk.bf16.mxu1 %vm273_vm1, %v1199_v27  ;;  %1140 = vmatpush3.bf16.msra.mxu1 %v1204_v38  ;;  %v1210_v27 = vld [vmem:[%s1561_s3] sm:$0xff]  }
  0x34   :  { %1141 = vmatprep.subr.bf16.mxu1 %v1237_v37 }
  0x36   :  { %1094 = vmatmul.mubr.msk.bf16.gmra.mxu0 %vm273_vm1, %v1182_v24 }
  0x37   :  { %1097 = vmatprep.mubr.msk.bf16.mxu0 %vm273_vm1, %v1183_v25  ;;  %1142 = vmatpush3.bf16.msra.mxu1 %v1205_v40 }
  0x38   :  { %1143 = vmatprep.subr.bf16.mxu1 %v1237_v37 }
  0x3a   :  { %1130 = vmatmul.mubr.msk.bf16.gmra.mxu1 %vm273_vm1, %v1200_v30 }
  0x3b   :  { %1133 = vmatprep.mubr.msk.bf16.mxu1 %vm273_vm1, %v1201_v31  ;;  %1144 = vmatpush3.bf16.msra.mxu1 %v1206_v52 }
  0x3c   :  { %1145 = vmatprep.subr.bf16.mxu1 %v1237_v37 }
  0x3e   :  { %1098 = vmatmul.mubr.msk.bf16.gmra.mxu0 %vm273_vm1, %v1184_v28 }
  0x3f   :  { %1101 = vmatprep.mubr.msk.bf16.mxu0 %vm273_vm1, %v1185_v29  ;;  %1146 = vmatpush3.bf16.msra.mxu1 %v1207_v60 }
  0x40   :  { %1147 = vmatprep.subr.bf16.mxu1 %v1237_v37 }
  0x42   :  { %1134 = vmatmul.mubr.msk.bf16.gmra.mxu1 %vm273_vm1, %v1202_v34 }
  0x43   :  { %1148 = vmatpush3.bf16.msra.mxu1 %v1208_v7  ;;  %1153 = vmatprep.mubr.msk.bf16.mxu1 %vm1238_vm2, %v1237_v37 }
  0x44   :  { %1149 = vmatprep.subr.bf16.mxu1 %v1237_v37 }
  0x46   :  { %1102 = vmatmul.mubr.msk.bf16.gmra.mxu0 %vm273_vm1, %v1186_v32 }
  0x47   :  { %1105 = vmatprep.mubr.msk.bf16.mxu0 %vm273_vm1, %v1187_v33  ;;  %1150 = vmatpush3.bf16.msra.mxu1 %v1209_v16 }
  0x48   :  { %1151 = vmatprep.subr.bf16.mxu1 %v1237_v37 }
  0x4b   :  { %1152 = vmatpush3.bf16.msra.mxu1 %v1210_v27 }
  0x4e   :  { %1106 = vmatmul.mubr.msk.bf16.gmra.mxu0 %vm273_vm1, %v1188_v35 }
  0xce   :  { %v1075_v39 = vpop.f32.mrf.mxu0  ;;  %v1437_v62 = vpop.f32.mrf.mxu1 }
  0xcf   :  { %v417_v46 = vadd.f32 %v1075_v39, %v1422_v42 }
  0xd0   :  { %v408_v41 = vpop.f32.mrf.mxu0  ;;  %v1446_v9 = vpop.f32.mrf.mxu1 }
  0xd1   :  { %v409_v44 = vadd.f32 %v1422_v42, %v408_v41  ;;  %v665_v54 = vmax.f32 %v417_v46, 0.0 }
  0xd2   :  { %v1076_v43 = vpop.f32.mrf.mxu0  ;;  %v1453_v18 = vpop.f32.mrf.mxu1 }
  0xd3   :  { %v663_v49 = vmax.f32 %v409_v44, 0.0  ;;  %v420_v50 = vadd.f32 %v1076_v43, %v1422_v42 }
  0xd4   :  { %v411_v45 = vpop.f32.mrf.mxu0  ;;  %v1462_v29 = vpop.f32.mrf.mxu1 }
  0xd5   :  { %v412_v47 = vadd.f32 %v1422_v42, %v411_v45  ;;  %v666_v58 = vmax.f32 %v420_v50, 0.0 }
  0xd6   :  { %v1079_v48 = vpop.f32.mrf.mxu0  ;;  %v1466_v38 = vpop.f32.mrf.mxu1 }
  0xd7   :  { %v664_v51 = vmax.f32 %v412_v47, 0.0  ;;  %v433_v63 = vadd.f32 %v1079_v48, %v1422_v42 }
  0xd8   :  { %v424_v53 = vpop.f32.mrf.mxu0 }
  0xd9   :  { %v727_v55 = vadd.f32 %v664_v51, %v663_v49  ;;  %v425_v56 = vadd.f32 %v1422_v42, %v424_v53  ;;  %v669_v10 = vmax.f32 %v433_v63, 0.0  ;;  %v1471_v49 = vpop.f32.mrf.mxu1 }
  0xda   :  { %v1080_v57 = vpop.f32.mrf.mxu0 }
  0xdb   :  { %v728_v59 = vadd.f32 %v727_v55, %v665_v54  ;;  %v667_v0 = vmax.f32 %v425_v56, 0.0  ;;  %v436_v5 = vadd.f32 %v1080_v57, %v1422_v42  ;;  %v1474_v56 = vpop.f32.mrf.mxu1 }
  0xdc   :  { %v427_v61 = vpop.f32.mrf.mxu0 }
  0xdd   :  { %v729_v1 = vadd.f32 %v728_v59, %v666_v58  ;;  %v428_v2 = vadd.f32 %v1422_v42, %v427_v61  ;;  %v670_v14 = vmax.f32 %v436_v5, 0.0 }
  0xde   :  { %v1083_v3 = vpop.f32.mrf.mxu0 }
  0xdf   :  { %v730_v4 = vadd.f32 %v729_v1, %v667_v0  ;;  %v668_v6 = vmax.f32 %v428_v2, 0.0  ;;  %v449_v19 = vadd.f32 %v1083_v3, %v1422_v42  ;;  %v1479_v3 = vpop.f32.mrf.mxu1 }
  0xe0   :  { %v440_v8 = vpop.f32.mrf.mxu0 }
  0xe1   :  { %v731_v11 = vadd.f32 %v730_v4, %v668_v6  ;;  %v441_v12 = vadd.f32 %v1422_v42, %v440_v8  ;;  %v673_v30 = vmax.f32 %v449_v19, 0.0 }
  0xe2   :  { %v1084_v13 = vpop.f32.mrf.mxu0 }
  0xe3   :  { %v732_v15 = vadd.f32 %v731_v11, %v669_v10  ;;  %v671_v20 = vmax.f32 %v441_v12, 0.0  ;;  %v452_v25 = vadd.f32 %v1084_v13, %v1422_v42  ;;  %v1482_v12 = vpop.f32.mrf.mxu1 }
  0xe4   :  { %v443_v17 = vpop.f32.mrf.mxu0 }
  0xe5   :  { %v733_v21 = vadd.f32 %v732_v15, %v670_v14  ;;  %v444_v22 = vadd.f32 %v1422_v42, %v443_v17  ;;  %v674_v34 = vmax.f32 %v452_v25, 0.0 }
  0xe6   :  { %v1087_v23 = vpop.f32.mrf.mxu0 }
  0xe7   :  { %v734_v24 = vadd.f32 %v733_v21, %v671_v20  ;;  %v672_v26 = vmax.f32 %v444_v22, 0.0  ;;  %v465_v39 = vadd.f32 %v1087_v23, %v1422_v42  ;;  %v1487_v23 = vpop.f32.mrf.mxu1 }
  0xe8   :  { %v456_v28 = vpop.f32.mrf.mxu0 }
  0xe9   :  { %v735_v31 = vadd.f32 %v734_v24, %v672_v26  ;;  %v457_v32 = vadd.f32 %v1422_v42, %v456_v28  ;;  %v677_v37 = vmax.f32 %v465_v39, 0.0 }
  0xea   :  { %v1088_v33 = vpop.f32.mrf.mxu0 }
  0xeb   :  { %v736_v35 = vadd.f32 %v735_v31, %v673_v30  ;;  %v675_v40 = vmax.f32 %v457_v32, 0.0  ;;  %v468_v46 = vadd.f32 %v1088_v33, %v1422_v42  ;;  %v1490_v32 = vpop.f32.mrf.mxu1 }
  0xec   :  { %v459_v36 = vpop.f32.mrf.mxu0 }
  0xed   :  { %v737_v41 = vadd.f32 %v736_v35, %v674_v34  ;;  %v460_v43 = vadd.f32 %v1422_v42, %v459_v36  ;;  %v678_v53 = vmax.f32 %v468_v46, 0.0 }
  0xee   :  { %v1091_v44 = vpop.f32.mrf.mxu0 }
  0xef   :  { %v738_v45 = vadd.f32 %v737_v41, %v675_v40  ;;  %v676_v47 = vmax.f32 %v460_v43, 0.0  ;;  %v481_v57 = vadd.f32 %v1091_v44, %v1422_v42 }
  0xf0   :  { %v472_v48 = vpop.f32.mrf.mxu0 }
  0xf1   :  { %v739_v50 = vadd.f32 %v738_v45, %v676_v47  ;;  %v473_v51 = vadd.f32 %v1422_v42, %v472_v48  ;;  %v681_v4 = vmax.f32 %v481_v57, 0.0  ;;  %v1495_v45 = vpop.f32.mrf.mxu1 }
  0xf2   :  { %v1092_v52 = vpop.f32.mrf.mxu0 }
  0xf3   :  { %v740_v54 = vadd.f32 %v739_v50, %v677_v37  ;;  %v679_v58 = vmax.f32 %v473_v51, 0.0  ;;  %v484_v0 = vadd.f32 %v1092_v52, %v1422_v42 }
  0xf4   :  { %v475_v55 = vpop.f32.mrf.mxu0 }
  0xf5   :  { %v741_v59 = vadd.f32 %v740_v54, %v678_v53  ;;  %v476_v60 = vadd.f32 %v1422_v42, %v475_v55  ;;  %v682_v8 = vmax.f32 %v484_v0, 0.0  ;;  %v1498_v53 = vpop.f32.mrf.mxu1 }
  0xf6   :  { %v1095_v61 = vpop.f32.mrf.mxu0 }
  0xf7   :  { %v742_v63 = vadd.f32 %v741_v59, %v679_v58  ;;  %v680_v1 = vmax.f32 %v476_v60, 0.0  ;;  %v497_v13 = vadd.f32 %v1095_v61, %v1422_v42 }
  0xf8   :  { %v488_v2 = vpop.f32.mrf.mxu0 }
  0xf9   :  { %v743_v5 = vadd.f32 %v742_v63, %v680_v1  ;;  %v489_v6 = vadd.f32 %v1422_v42, %v488_v2  ;;  %v685_v24 = vmax.f32 %v497_v13, 0.0  ;;  %v600_v1 = vpop.f32.mrf.mxu1 }
  0xfa   :  { %v1096_v7 = vpop.f32.mrf.mxu0 }
  0xfb   :  { %v744_v10 = vadd.f32 %v743_v5, %v681_v4  ;;  %v683_v14 = vmax.f32 %v489_v6, 0.0  ;;  %v500_v20 = vadd.f32 %v1096_v7, %v1422_v42 }
  0xfc   :  { %v491_v11 = vpop.f32.mrf.mxu0 }
  0xfd   :  { %v745_v15 = vadd.f32 %v744_v10, %v682_v8  ;;  %v492_v16 = vadd.f32 %v1422_v42, %v491_v11  ;;  %v686_v28 = vmax.f32 %v500_v20, 0.0  ;;  %v1124_v11 = vpop.f32.mrf.mxu1 }
  0xfe   :  { %v1099_v17 = vpop.f32.mrf.mxu0 }
  0xff   :  { %v746_v19 = vadd.f32 %v745_v15, %v683_v14  ;;  %v684_v21 = vmax.f32 %v492_v16, 0.0  ;;  %v513_v33 = vadd.f32 %v1099_v17, %v1422_v42  ;;  %v603_v20 = vpop.f32.mrf.mxu1 }
 0x100   :  { %v504_v22 = vpop.f32.mrf.mxu0 }
 0x101   :  { %v747_v25 = vadd.f32 %v746_v19, %v684_v21  ;;  %v505_v26 = vadd.f32 %v1422_v42, %v504_v22  ;;  %v689_v46 = vmax.f32 %v513_v33, 0.0  ;;  %v553_v22 = vadd.f32 %v1422_v42, %v1446_v9 }
 0x102   :  { %v1100_v27 = vpop.f32.mrf.mxu0 }
 0x103   :  { %v748_v30 = vadd.f32 %v747_v25, %v685_v24  ;;  %v687_v34 = vmax.f32 %v505_v26, 0.0  ;;  %v516_v41 = vadd.f32 %v1100_v27, %v1422_v42  ;;  %v556_v27 = vadd.f32 %v1422_v42, %v1462_v29 }
 0x104   :  { %v507_v31 = vpop.f32.mrf.mxu0  ;;  %v572_v29 = vadd.f32 %v1422_v42, %v1479_v3  ;;  %v588_v3 = vadd.f32 %v1422_v42, %v1495_v45  ;;  %v604_v45 = vadd.f32 %v1422_v42, %v603_v20 }
 0x105   :  { %v749_v35 = vadd.f32 %v748_v30, %v686_v28  ;;  %v508_v36 = vadd.f32 %v1422_v42, %v507_v31  ;;  %v690_v50 = vmax.f32 %v516_v41, 0.0  ;;  %v1127_v28 = vpop.f32.mrf.mxu1  ;;  %v561_v30 = vadd.f32 %v1437_v62, %v1422_v42 }
 0x106   :  { %v1103_v39 = vpop.f32.mrf.mxu0  ;;  %v699_v31 = vmax.f32 %v553_v22, 0.0  ;;  %v569_v41 = vadd.f32 %v1422_v42, %v1471_v49  ;;  %v577_v62 = vadd.f32 %v1466_v38, %v1422_v42  ;;  %v585_v49 = vadd.f32 %v1422_v42, %v1487_v23 }
 0x107   :  { %v750_v40 = vadd.f32 %v749_v35, %v687_v34  ;;  %v688_v43 = vmax.f32 %v508_v36, 0.0  ;;  %v529_v54 = vadd.f32 %v1103_v39, %v1422_v42  ;;  %v564_v34 = vadd.f32 %v1453_v18, %v1422_v42  ;;  %v616_v39 = vpop.f32.mrf.mxu1 }
 0x108   :  { %v520_v44 = vpop.f32.mrf.mxu0  ;;  %v700_v35 = vmax.f32 %v556_v27, 0.0  ;;  %v593_v38 = vadd.f32 %v1482_v12, %v1422_v42  ;;  %v601_v23 = vadd.f32 %v1422_v42, %v600_v1  ;;  %v609_v12 = vadd.f32 %v1498_v53, %v1422_v42 }
 0x109   :  { %v751_v47 = vadd.f32 %v750_v40, %v688_v43  ;;  %v521_v48 = vadd.f32 %v1422_v42, %v520_v44  ;;  %v693_v2 = vmax.f32 %v529_v54, 0.0  ;;  %v701_v40 = vmax.f32 %v561_v30, 0.0 }
 0x10a   :  { %v1104_v37 = vpop.f32.mrf.mxu0  ;;  %v702_v43 = vmax.f32 %v564_v34, 0.0 }
 0x10b   :  { %v752_v51 = vadd.f32 %v751_v47, %v689_v46  ;;  %v691_v55 = vmax.f32 %v521_v48, 0.0  ;;  %v532_v61 = vadd.f32 %v1104_v37, %v1422_v42  ;;  %v1128_v46 = vpop.f32.mrf.mxu1  ;;  %v703_v47 = vmax.f32 %v569_v41, 0.0 }
 0x10c   :  { %v523_v52 = vpop.f32.mrf.mxu0  ;;  %v580_v37 = vadd.f32 %v1474_v56, %v1422_v42  ;;  %v596_v56 = vadd.f32 %v1490_v32, %v1422_v42  ;;  %v712_v32 = vmax.f32 %v604_v45, 0.0  ;;  %v628_v30 = vadd.f32 %v1128_v46, %v1422_v42 }
 0x10d   :  { %v753_v57 = vadd.f32 %v752_v51, %v690_v50  ;;  %v524_v58 = vadd.f32 %v1422_v42, %v523_v52  ;;  %v694_v6 = vmax.f32 %v532_v61, 0.0  ;;  %v704_v50 = vmax.f32 %v572_v29, 0.0  ;;  %v619_v51 = vpop.f32.mrf.mxu1 }
 0x10e   :  { %v1107_v59 = vpop.f32.mrf.mxu0  ;;  %v705_v52 = vmax.f32 %v577_v62, 0.0 }
 0x10f   :  { %v754_v60 = vadd.f32 %v753_v57, %v691_v55  ;;  %v692_v63 = vmax.f32 %v524_v58, 0.0  ;;  %v545_v14 = vadd.f32 %v1107_v59, %v1422_v42  ;;  %v706_v55 = vmax.f32 %v580_v37, 0.0  ;;  %v1131_v58 = vpop.f32.mrf.mxu1 }
 0x110   :  { %v536_v0 = vpop.f32.mrf.mxu0  ;;  %v707_v59 = vmax.f32 %v585_v49, 0.0  ;;  %v641_v41 = vadd.f32 %v1131_v58, %v1422_v42 }
 0x111   :  { %v755_v4 = vadd.f32 %v754_v60, %v692_v63  ;;  %v537_v8 = vadd.f32 %v1422_v42, %v536_v0  ;;  %v697_v21 = vmax.f32 %v545_v14, 0.0  ;;  %v708_v63 = vmax.f32 %v588_v3, 0.0  ;;  %v632_v0 = vpop.f32.mrf.mxu1 }
 0x112   :  { %v1108_v5 = vpop.f32.mrf.mxu0 }
 0x113   :  { %v756_v7 = vadd.f32 %v755_v4, %v693_v2  ;;  %v695_v16 = vmax.f32 %v537_v8, 0.0  ;;  %v548_v17 = vadd.f32 %v1108_v5, %v1422_v42  ;;  %v709_v2 = vmax.f32 %v593_v38, 0.0 }
 0x114   :  { %v539_v10 = vpop.f32.mrf.mxu0  ;;  %v710_v5 = vmax.f32 %v596_v56, 0.0  ;;  %v711_v8 = vmax.f32 %v601_v23, 0.0 }
 0x115   :  { %v1504_v13 = vadd.f32 %v756_v7, %v694_v6  ;;  %v540_v15 = vadd.f32 %v1422_v42, %v539_v10  ;;  %v698_v25 = vmax.f32 %v548_v17, 0.0  ;;  %v1132_v7 = vpop.f32.mrf.mxu1  ;;  %v713_v17 = vmax.f32 %v609_v12, 0.0 }
 0x116   :  { %v644_v46 = vadd.f32 %v1132_v7, %v1422_v42 }
 0x117   :  { %v696_v19 = vmax.f32 %v540_v15, 0.0  ;;  %v612_v15 = vadd.f32 %v1124_v11, %v1422_v42 }
 0x119   :  { %v764_v24 = vadd.f32 %v696_v19, %v695_v16  ;;  %v635_v16 = vpop.f32.mrf.mxu1  ;;  %v714_v1 = vmax.f32 %v612_v15, 0.0 }
 0x11b   :  { %v765_v26 = vadd.f32 %v764_v24, %v697_v21  ;;  %v617_v21 = vadd.f32 %v1422_v42, %v616_v39  ;;  %v620_v24 = vadd.f32 %v1422_v42, %v619_v51  ;;  %v1135_v20 = vpop.f32.mrf.mxu1  ;;  %v722_v51 = vmax.f32 %v644_v46, 0.0 }
 0x11c   :  { %v657_v49 = vadd.f32 %v1135_v20, %v1422_v42 }
 0x11d   :  { %v766_v33 = vadd.f32 %v765_v26, %v698_v25  ;;  %v625_v25 = vadd.f32 %v1127_v28, %v1422_v42  ;;  %v715_v26 = vmax.f32 %v617_v21, 0.0  ;;  %v648_v11 = vpop.f32.mrf.mxu1 }
 0x11e   :  { %v649_v37 = vadd.f32 %v1422_v42, %v648_v11 }
 0x11f   :  { %v767_v36 = vadd.f32 %v766_v33, %v699_v31  ;;  %v716_v31 = vmax.f32 %v620_v24, 0.0  ;;  %v717_v33 = vmax.f32 %v625_v25, 0.0 }
 0x121   :  { %v768_v9 = vadd.f32 %v767_v36, %v700_v35  ;;  %v633_v35 = vadd.f32 %v1422_v42, %v632_v0  ;;  %v718_v36 = vmax.f32 %v628_v30, 0.0 }
 0x123   :  { %v769_v44 = vadd.f32 %v768_v9, %v701_v40  ;;  %v636_v40 = vadd.f32 %v1422_v42, %v635_v16  ;;  %v1136_v9 = vpop.f32.mrf.mxu1 }
 0x124   :  { %v660_v38 = vadd.f32 %v1136_v9, %v1422_v42 }
 0x125   :  { %v770_v48 = vadd.f32 %v769_v44, %v702_v43  ;;  %v719_v43 = vmax.f32 %v633_v35, 0.0  ;;  %v758_v44 = vrot.slane %v1504_v13, 4  ;;  %v720_v62 = vmax.f32 %v636_v40, 0.0 }
 0x127   :  { %v771_v18 = vadd.f32 %v770_v48, %v703_v47  ;;  %v651_v47 = vpop.f32.mrf.mxu1  ;;  %v721_v48 = vmax.f32 %v641_v41, 0.0 }
 0x129   :  { %v772_v54 = vadd.f32 %v771_v18, %v704_v50  ;;  %v759_v50 = vadd.f32 %v758_v44, %v1504_v13 }
 0x12b   :  { %v773_v57 = vadd.f32 %v772_v54, %v705_v52  ;;  %v652_v54 = vadd.f32 %v1422_v42, %v651_v47  ;;  %v760_v3 = vrot.slane %v759_v50, 2 }
 0x12d   :  { %v774_v60 = vadd.f32 %v773_v57, %v706_v55  ;;  %v723_v55 = vmax.f32 %v649_v37, 0.0  ;;  %v761_v56 = vadd.f32 %v760_v3, %v759_v50 }
 0x12f   :  { %v775_v61 = vadd.f32 %v774_v60, %v707_v59  ;;  %v724_v59 = vmax.f32 %v652_v54, 0.0  ;;  %v725_v60 = vmax.f32 %v657_v49, 0.0  ;;  %v762_v13 = vrot.slane %v761_v56, 1 }
 0x131   :  { %v776_v4 = vadd.f32 %v775_v61, %v708_v63  ;;  %v726_v63 = vmax.f32 %v660_v38, 0.0 }
 0x133   :  { %v777_v6 = vadd.f32 %v776_v4, %v709_v2 }
 0x135   :  { %v778_v10 = vadd.f32 %v777_v6, %v710_v5  ;;  %v763_v5 = vadd.f32 %v762_v13, %v761_v56 }
 0x137   :  { %v779_v14 = vadd.f32 %v778_v10, %v711_v8  ;;  %v801_v7 = vmul.f32 0.00390625, %v763_v5 }
 0x139   :  { %v780_v19 = vadd.f32 %v779_v14, %v712_v32  ;;  %v803_v10 = vpack.c.bf16 %v801_v7, %v801_v7 }
 0x13b   :  { %v781_v22 = vadd.f32 %v780_v19, %v713_v17  ;;  %v830_v42 = vunpack.c.l.b16 %v803_v10  ;;  %v1013_v19 = vld [vmem:[%s1562_s4] ss:$0 sm:$0xff] }
 0x13d   :  { %v782_v53 = vadd.f32 %v781_v22, %v714_v1 }
 0x13f   :  { %v783_v27 = vadd.f32 %v782_v53, %v715_v26 }
 0x141   :  { %v784_v34 = vadd.f32 %v783_v27, %v716_v31 }
 0x143   :  { %v785_v39 = vadd.f32 %v784_v34, %v717_v33 }
 0x145   :  { %v786_v28 = vadd.f32 %v785_v39, %v718_v36 }
 0x147   :  { %v787_v29 = vadd.f32 %v786_v28, %v719_v43 }
 0x149   :  { %v788_v18 = vadd.f32 %v787_v29, %v720_v62 }
 0x14b   :  { %v789_v52 = vadd.f32 %v788_v18, %v721_v48 }
 0x14d   :  { %v790_v57 = vadd.f32 %v789_v52, %v722_v51 }
 0x14f   :  { %v791_v58 = vadd.f32 %v790_v57, %v723_v55 }
 0x151   :  { %v792_v61 = vadd.f32 %v791_v58, %v724_v59 }
 0x153   :  { %v793_v0 = vadd.f32 %v792_v61, %v725_v60 }
 0x155   :  { %v794_v2 = vadd.f32 %v793_v0, %v726_v63 }
 0x157   :  { %v795_v4 = vrot.slane %v794_v2, 4 }
 0x159   :  { %v796_v23 = vadd.f32 %v795_v4, %v794_v2 }
 0x15b   :  { %v797_v6 = vrot.slane %v796_v23, 2 }
 0x15d   :  { %v798_v45 = vadd.f32 %v797_v6, %v796_v23 }
 0x15f   :  { %v799_v12 = vrot.slane %v798_v45, 1 }
 0x161   :  { %v800_v8 = vadd.f32 %v799_v12, %v798_v45 }
 0x163   :  { %v802_v14 = vmul.f32 0.00390625, %v800_v8 }
 0x165   :  { %v804_v15 = vpack.c.bf16 %v802_v14, %v802_v14 }
 0x167   :  { %v831_v32 = vunpack.c.l.b16 %v804_v15 }
 0x169   :  { %v833_v16 = vsel %vm832_vm3, %v831_v32, %v830_v42 }
 0x16a   :  { %v834_v17 = vpack.c.b16 %v833_v16, %v833_v16 }
 0x16c   :  { %1154 = vmatmul.mubr.bf16.vlgmr.msra.gmra.mxu1 %v834_v17 }
 0x22c   :  { %v918_v21 = vpop.f32.mrf.mxu1 }
 0x22d   :  { %v919_v1 = vadd.f32 %v1013_v19, %v918_v21 }
 0x22e   :  { %v1155_v22 = vpop.f32.mrf.mxu1 }
 0x22f   :  { %v1022_v24 = vmul.f32 -1.442695, %v919_v1 }
 0x230   :  { %v921_v20 = vpop.f32.mrf.mxu1 }
 0x231   :  { %1211 = vpow2.f32 %v1022_v24 }
 0x232   :  { %v1156_v25 = vpop.f32.mrf.mxu1 }
 0x23e   :  { %v1212_v26 = vpop.eup %1211 }
 0x23f   :  { %v927_v53 = vadd.f32 1.0, %v1212_v26 }
 0x241   :  { %1213 = vrcp.f32 %v927_v53 }
 0x24e   :  { %v1214_v27 = vpop.eup %1213 }
 0x24f   :  { %930 = vst [vmem:[#allocation2] sm:$0x3] %v1214_v27 }
 0x250   :  { %1226 = shalt.err (!%p1223_p4)
}
 0x251   :  { %940 = dma.vmem_to_hbm [thread:$0]  %s938_s28, 32, %s1563_s5, [#allocation3]  }
 0x252   :  { %1235 = dma.done.wait [#allocation3], 32  }
 0x253   :  { %1236 = vsyncadd [#allocation3], 4294967264 }
 0x254   :  { %944 = vsyncpa [#allocation3], 1 }

</bundles_post_ra>
